<compile_context>
chip_gen: v7x
topology: tpu7x:2x2x1
jax: 0.10.0
libtpu: 0.0.40
codegen_flags: <defaults>
</compile_context>

<pallas_src>
import jax
import jax.numpy as jnp
from jax.experimental import pallas as pl
from jax.experimental.pallas import tpu as pltpu

# ---- static hyper-parameters (mirror RGBDLoss.__init__ arguments) -----------
RHO_J2D = 100.0
RHO_CLOSE_PLANE = 0.01
DATA_WEIGHT = 1.0
SHAPE_WEIGHT = 1.0
BODY_POSE_WEIGHT = 1.0
INSIDE_PLANE_WEIGHT = 1.0
CLOSE_PLANE_WEIGHT = 1.0
PLANE_BUFFER = 0.005          # buffer arg of get_signed_dists_to_plane

MAX_TB = 256                  # samples per grid step (256-512 safe everywhere)


def _round_up(x, m):
    return ((x + m - 1) // m) * m


def _gmof(x, rho):
    """smplify-x GMoF robustifier: rho^2 * x^2 / (x^2 + rho^2).

    Denominator reciprocal is pushed to the EUP (its own VLIW slot).
    """
    sq = x * x
    rho2 = rho * rho
    return (rho2 * sq) * pl.reciprocal(sq + rho2, approx=True)


def _make_rgbd_loss_kernel(n_joints, n_foot):
    inv_2j = 1.0 / (2.0 * n_joints)
    inv_nf = 1.0 / float(n_foot)

    def kernel(cam_ref, joint_ref, pose_ref, betas_ref, foot_ref, out_ref):
        # per-sample camera intrinsics (stand-in for `camera(...)`) and
        # ground-plane coefficients, as (TB, 1) columns for row-broadcast.
        cam = cam_ref[...]                       # (TB, 8)
        fx = cam[:, 0:1]
        fy = cam[:, 1:2]
        cx = cam[:, 2:3]
        cy = cam[:, 3:4]
        pa = cam[:, 4:5]
        pb = cam[:, 5:6]
        pc = cam[:, 6:7]
        pd = cam[:, 7:8]

        # joint slab rows: X, Y, Z, gt_u, gt_v, conf, joint_weight  -> (TB, J)
        X = joint_ref[0]
        Y = joint_ref[1]
        Z = joint_ref[2]
        gu = joint_ref[3]
        gv = joint_ref[4]
        conf = joint_ref[5]
        jw = joint_ref[6]

        # ---- pinhole projection of joints (exact divide for parity) ---------
        inv_z = 1.0 / Z
        px = fx * X * inv_z + cx
        py = fy * Y * inv_z + cy

        # ---- robust 2D joint data term ---------------------------------------
        dx = gu - px
        dy = gv - py
        g = _gmof(dx, RHO_J2D) + _gmof(dy, RHO_J2D)
        w = jw * conf                               # use_joints_conf=True
        w2g = (w * w) * g

        jsum = jnp.sum(w2g, axis=-1, keepdims=True)     # (TB, 1)
        wsum = jnp.sum(w, axis=-1, keepdims=True)       # (TB, 1)

        # ---- priors -----------------------------------------------------------
        # TODO(synk): body_pose_prior is an external GMM prior and shape_prior a
        #             learned L2 prior in smplify-x; quadratic stand-ins here.
        pose = pose_ref[...]                            # (TB, 63)
        beta = betas_ref[...]                           # (TB, 10)
        posesum = jnp.sum(pose * pose, axis=-1, keepdims=True)
        betasum = jnp.sum(beta * beta, axis=-1, keepdims=True)

        # ---- ground-plane terms on foot-sole vertices --------------------------
        fxr = foot_ref[0]                               # (TB, NF)
        fyr = foot_ref[1]
        fzr = foot_ref[2]

        inv_norm = jax.lax.rsqrt(pa * pa + pb * pb + pc * pc)   # (TB, 1)
        # TODO(synk): exact sign/buffer convention of get_signed_dists_to_plane
        #             is project-internal; standard signed distance minus buffer.
        sd = (fxr * pa + fyr * pb + fzr * pc + pd) * inv_norm - PLANE_BUFFER
        inside = jnp.clip(sd, -1.0, 0.0)
        # abs() dropped before GMoF: GMoF only uses x*x.
        close = _gmof(sd, RHO_CLOSE_PLANE)

        insidesum = jnp.sum(inside * inside, axis=-1, keepdims=True)
        closesum = jnp.sum(close, axis=-1, keepdims=True)

        # ---- combine per-sample scalar losses ----------------------------------
        # joint_loss = 118 * mean(weights**2 * gmof(diff), [1, 2]) * data_w**2
        joint_loss = 118.0 * (jsum * inv_2j) * (DATA_WEIGHT ** 2)
        joint_loss = jnp.where(wsum > 0.0, joint_loss, 0.0)   # `if sum(w) > 0`

        pprior_loss = posesum * (BODY_POSE_WEIGHT ** 2)
        # spec uses first-power shape_weight: sum(shape_prior(betas)) * shape_w
        shape_loss = betasum * SHAPE_WEIGHT
        inside_loss = INSIDE_PLANE_WEIGHT * insidesum * inv_nf
        # spec squares the *sum*: close_plane_weight * sum(gmof(|sd|)).pow(2)
        close_loss = CLOSE_PLANE_WEIGHT * (closesum * closesum)

        out_ref[...] = (pprior_loss + joint_loss + shape_loss
                        + inside_loss + close_loss)

    return kernel


def rgbd_loss(joints3d, gt_joints, joints_conf, joint_weights,
              body_pose, betas, foot_verts, cam_params, plane_params):
    """Batched RGBD loss.

    joints3d      [B, J, 3], gt_joints [B, J, 2],
    joints_conf   [B, J],    joint_weights [B, J],
    body_pose     [B, P],    betas [B, S],
    foot_verts    [B, Nf, 3] (already gathered with foot_sole_v_ids),
    cam_params    [B, 4] (fx, fy, cx, cy),  plane_params [B, 4] (a, b, c, d).
    Returns per-sample total loss, shape [B].
    """
    f32 = jnp.float32
    B, J, _ = joints3d.shape
    NF = foot_verts.shape[1]
    NPOSE = body_pose.shape[1]
    NBETA = betas.shape[1]

    # Samples per grid step: multiple of 8 (sublane alignment), capped so the
    # per-block working set stays tiny on every chip's VMEM budget.
    TB = min(MAX_TB, _round_up(B, 8))
    B_pad = _round_up(B, TB)
    pad = B_pad - B
    num_blocks = B_pad // TB

    def padb(x, value=0.0):
        x = x.astype(f32)
        if pad:
            cfg = [(0, pad)] + [(0, 0)] * (x.ndim - 1)
            x = jnp.pad(x, cfg, constant_values=value)
        return x

    # joint slab [7, B_pad, J]: slicing along dim 0 inside the kernel yields a
    # dense (TB, J) tile (samples in sublanes, joints in lanes), no relayout.
    joint_stack = jnp.stack(
        [padb(joints3d[..., 0]), padb(joints3d[..., 1]),
         padb(joints3d[..., 2], 1.0),                 # pad Z with 1 (safe 1/Z)
         padb(gt_joints[..., 0]), padb(gt_joints[..., 1]),
         padb(joints_conf), padb(joint_weights)],
        axis=0)

    foot_stack = jnp.stack(
        [padb(foot_verts[..., 0]), padb(foot_verts[..., 1]),
         padb(foot_verts[..., 2])],
        axis=0)                                       # [3, B_pad, NF]

    pose = padb(body_pose)                            # [B_pad, NPOSE]
    beta = padb(betas)                                # [B_pad, NBETA]

    camplane = jnp.concatenate(
        [cam_params.astype(f32), plane_params.astype(f32)], axis=-1)  # [B, 8]
    if pad:
        benign = jnp.tile(
            jnp.array([[1.0, 1.0, 0.0, 0.0, 0.0, 1.0, 0.0, 0.0]], f32),
            (pad, 1))
        camplane = jnp.concatenate([camplane, benign], axis=0)        # [B_pad, 8]

    kernel = _make_rgbd_loss_kernel(J, NF)

    out = pl.pallas_call(
        kernel,
        out_shape=jax.ShapeDtypeStruct((B_pad, 1), f32),
        grid=(num_blocks,),
        in_specs=[
            pl.BlockSpec((TB, 8), lambda g: (g, 0)),
            pl.BlockSpec((7, TB, J), lambda g: (0, g, 0)),
            pl.BlockSpec((TB, NPOSE), lambda g: (g, 0)),
            pl.BlockSpec((TB, NBETA), lambda g: (g, 0)),
            pl.BlockSpec((3, TB, NF), lambda g: (0, g, 0)),
        ],
        out_specs=pl.BlockSpec((TB, 1), lambda g: (g, 0)),
        compiler_params=pltpu.CompilerParams(
            dimension_semantics=("parallel",)),
    )(camplane, joint_stack, pose, beta, foot_stack)

    return out[:B, 0]


if __name__ == "__main__":
    key = jax.random.PRNGKey(0)
    k = jax.random.split(key, 8)

    B, J, NV, NF = 2, 24, 64, 16      # batch, joints, verts, foot-sole verts
    NPOSE, NBETA = 63, 10

    # body model outputs
    joints3d = jax.random.normal(k[0], (B, J, 3), jnp.float32) * 0.3
    joints3d = joints3d.at[..., 2].set(jnp.abs(joints3d[..., 2]) + 2.0)  # z > 0
    vertices = jax.random.normal(k[1], (B, NV, 3), jnp.float32) * 0.5
    body_pose = jax.random.normal(k[2], (B, NPOSE), jnp.float32) * 0.1
    betas = jax.random.normal(k[3], (B, NBETA), jnp.float32) * 0.1

    # ground-truth 2D joints + confidences + per-joint weights
    gt_joints = jax.random.uniform(k[4], (B, J, 2), jnp.float32,
                                   minval=0.0, maxval=512.0)
    joints_conf = jax.random.uniform(k[5], (B, J), jnp.float32)
    joint_weights = jnp.ones((B, J), jnp.float32)

    # deterministic foot-sole vertex ids (stand-in for get_foot_sole_v_ids)
    foot_sole_v_ids = jnp.arange(NF, dtype=jnp.int32) * (NV // NF)
    foot_verts = vertices[:, foot_sole_v_ids]               # [B, NF, 3]

    # camera intrinsics and ground-plane parameters (per sample)
    cam_params = jnp.tile(jnp.array([[500.0, 500.0, 256.0, 256.0]],
                                    jnp.float32), (B, 1))
    plane_params = jnp.tile(jnp.array([[0.0, 1.0, 0.0, 0.8]],
                                      jnp.float32), (B, 1))

    total_loss = rgbd_loss(joints3d, gt_joints, joints_conf, joint_weights,
                           body_pose, betas, foot_verts,
                           cam_params, plane_params)
    total_loss = jax.block_until_ready(total_loss)
    assert total_loss.shape == (B,)
    assert bool(jnp.all(jnp.isfinite(total_loss)))
    print("KERNEL_OK")
</pallas_src>

<mosaic_0001>
module attributes {stable_mosaic.version = 11 : i64} {
  func.func @kernel(%arg0: i32, %arg1: memref<8x8xf32, #tpu.memory_space<vmem>>, %arg2: memref<7x8x24xf32, #tpu.memory_space<vmem>>, %arg3: memref<8x63xf32, #tpu.memory_space<vmem>>, %arg4: memref<8x10xf32, #tpu.memory_space<vmem>>, %arg5: memref<3x8x16xf32, #tpu.memory_space<vmem>>, %arg6: memref<8x1xf32, #tpu.memory_space<vmem>>) attributes {dimension_semantics = [#tpu.dimension_semantics<parallel>], iteration_bounds = array<i64: 1>, scalar_prefetch = 0 : i64, scratch_operands = 0 : i64, tpu.core_type = #tpu.core_type<tc>, window_params = [{transform_indices = @transform_0, window_bounds = array<i64: 8, 8>}, {transform_indices = @transform_1, window_bounds = array<i64: 7, 8, 24>}, {transform_indices = @transform_2, window_bounds = array<i64: 8, 63>}, {transform_indices = @transform_3, window_bounds = array<i64: 8, 10>}, {transform_indices = @transform_4, window_bounds = array<i64: 3, 8, 16>}, {transform_indices = @transform_5, window_bounds = array<i64: 8, 1>}]} {
    %c0 = arith.constant 0 : index
    %c0_0 = arith.constant 0 : index
    %0 = vector.load %arg1[%c0, %c0_0] : memref<8x8xf32, #tpu.memory_space<vmem>>, vector<8x8xf32>
    %1 = vector.extract_strided_slice %0 {offsets = [0, 0], sizes = [8, 1], strides = [1, 1]} : vector<8x8xf32> to vector<8x1xf32>
    %2 = vector.extract_strided_slice %0 {offsets = [0, 1], sizes = [8, 1], strides = [1, 1]} : vector<8x8xf32> to vector<8x1xf32>
    %3 = vector.extract_strided_slice %0 {offsets = [0, 2], sizes = [8, 1], strides = [1, 1]} : vector<8x8xf32> to vector<8x1xf32>
    %4 = vector.extract_strided_slice %0 {offsets = [0, 3], sizes = [8, 1], strides = [1, 1]} : vector<8x8xf32> to vector<8x1xf32>
    %5 = vector.extract_strided_slice %0 {offsets = [0, 4], sizes = [8, 1], strides = [1, 1]} : vector<8x8xf32> to vector<8x1xf32>
    %6 = vector.extract_strided_slice %0 {offsets = [0, 5], sizes = [8, 1], strides = [1, 1]} : vector<8x8xf32> to vector<8x1xf32>
    %7 = vector.extract_strided_slice %0 {offsets = [0, 6], sizes = [8, 1], strides = [1, 1]} : vector<8x8xf32> to vector<8x1xf32>
    %8 = vector.extract_strided_slice %0 {offsets = [0, 7], sizes = [8, 1], strides = [1, 1]} : vector<8x8xf32> to vector<8x1xf32>
    %c0_1 = arith.constant 0 : index
    %c0_2 = arith.constant 0 : index
    %c0_3 = arith.constant 0 : index
    %9 = vector.load %arg2[%c0_1, %c0_2, %c0_3] : memref<7x8x24xf32, #tpu.memory_space<vmem>>, vector<1x8x24xf32>
    %10 = vector.shape_cast %9 : vector<1x8x24xf32> to vector<8x24xf32>
    %c1 = arith.constant 1 : index
    %c0_4 = arith.constant 0 : index
    %c0_5 = arith.constant 0 : index
    %11 = vector.load %arg2[%c1, %c0_4, %c0_5] : memref<7x8x24xf32, #tpu.memory_space<vmem>>, vector<1x8x24xf32>
    %12 = vector.shape_cast %11 : vector<1x8x24xf32> to vector<8x24xf32>
    %c2 = arith.constant 2 : index
    %c0_6 = arith.constant 0 : index
    %c0_7 = arith.constant 0 : index
    %13 = vector.load %arg2[%c2, %c0_6, %c0_7] : memref<7x8x24xf32, #tpu.memory_space<vmem>>, vector<1x8x24xf32>
    %14 = vector.shape_cast %13 : vector<1x8x24xf32> to vector<8x24xf32>
    %c3 = arith.constant 3 : index
    %c0_8 = arith.constant 0 : index
    %c0_9 = arith.constant 0 : index
    %15 = vector.load %arg2[%c3, %c0_8, %c0_9] : memref<7x8x24xf32, #tpu.memory_space<vmem>>, vector<1x8x24xf32>
    %16 = vector.shape_cast %15 : vector<1x8x24xf32> to vector<8x24xf32>
    %c4 = arith.constant 4 : index
    %c0_10 = arith.constant 0 : index
    %c0_11 = arith.constant 0 : index
    %17 = vector.load %arg2[%c4, %c0_10, %c0_11] : memref<7x8x24xf32, #tpu.memory_space<vmem>>, vector<1x8x24xf32>
    %18 = vector.shape_cast %17 : vector<1x8x24xf32> to vector<8x24xf32>
    %c5 = arith.constant 5 : index
    %c0_12 = arith.constant 0 : index
    %c0_13 = arith.constant 0 : index
    %19 = vector.load %arg2[%c5, %c0_12, %c0_13] : memref<7x8x24xf32, #tpu.memory_space<vmem>>, vector<1x8x24xf32>
    %20 = vector.shape_cast %19 : vector<1x8x24xf32> to vector<8x24xf32>
    %c6 = arith.constant 6 : index
    %c0_14 = arith.constant 0 : index
    %c0_15 = arith.constant 0 : index
    %21 = vector.load %arg2[%c6, %c0_14, %c0_15] : memref<7x8x24xf32, #tpu.memory_space<vmem>>, vector<1x8x24xf32>
    %22 = vector.shape_cast %21 : vector<1x8x24xf32> to vector<8x24xf32>
    %cst = arith.constant 1.000000e+00 : f32
    %23 = vector.broadcast %cst : f32 to vector<8x24xf32>
    %24 = arith.divf %23, %14 : vector<8x24xf32>
    %25 = vector.broadcast %1 : vector<8x1xf32> to vector<8x24xf32>
    %26 = arith.mulf %25, %10 : vector<8x24xf32>
    %27 = arith.mulf %26, %24 : vector<8x24xf32>
    %28 = vector.broadcast %3 : vector<8x1xf32> to vector<8x24xf32>
    %29 = arith.addf %27, %28 : vector<8x24xf32>
    %30 = vector.broadcast %2 : vector<8x1xf32> to vector<8x24xf32>
    %31 = arith.mulf %30, %12 : vector<8x24xf32>
    %32 = arith.mulf %31, %24 : vector<8x24xf32>
    %33 = vector.broadcast %4 : vector<8x1xf32> to vector<8x24xf32>
    %34 = arith.addf %32, %33 : vector<8x24xf32>
    %35 = arith.subf %16, %29 : vector<8x24xf32>
    %36 = arith.subf %18, %34 : vector<8x24xf32>
    %37 = arith.mulf %35, %35 : vector<8x24xf32>
    %cst_16 = arith.constant 1.000000e+04 : f32
    %38 = vector.broadcast %cst_16 : f32 to vector<8x24xf32>
    %39 = arith.mulf %38, %37 : vector<8x24xf32>
    %cst_17 = arith.constant 1.000000e+04 : f32
    %40 = vector.broadcast %cst_17 : f32 to vector<8x24xf32>
    %41 = arith.addf %37, %40 : vector<8x24xf32>
    %42 = tpu.reciprocal %41 {approx = true} : vector<8x24xf32> -> vector<8x24xf32>
    %43 = arith.mulf %39, %42 : vector<8x24xf32>
    %44 = arith.mulf %36, %36 : vector<8x24xf32>
    %cst_18 = arith.constant 1.000000e+04 : f32
    %45 = vector.broadcast %cst_18 : f32 to vector<8x24xf32>
    %46 = arith.mulf %45, %44 : vector<8x24xf32>
    %cst_19 = arith.constant 1.000000e+04 : f32
    %47 = vector.broadcast %cst_19 : f32 to vector<8x24xf32>
    %48 = arith.addf %44, %47 : vector<8x24xf32>
    %49 = tpu.reciprocal %48 {approx = true} : vector<8x24xf32> -> vector<8x24xf32>
    %50 = arith.mulf %46, %49 : vector<8x24xf32>
    %51 = arith.addf %43, %50 : vector<8x24xf32>
    %52 = arith.mulf %22, %20 : vector<8x24xf32>
    %53 = arith.mulf %52, %52 : vector<8x24xf32>
    %54 = arith.mulf %53, %51 : vector<8x24xf32>
    %cst_20 = arith.constant dense<0.000000e+00> : vector<8xf32>
    %55 = vector.multi_reduction <add>, %54, %cst_20 [1] : vector<8x24xf32> to vector<8xf32>
    %56 = vector.shape_cast %55 : vector<8xf32> to vector<8x1xf32>
    %cst_21 = arith.constant dense<0.000000e+00> : vector<8xf32>
    %57 = vector.multi_reduction <add>, %52, %cst_21 [1] : vector<8x24xf32> to vector<8xf32>
    %58 = vector.shape_cast %57 : vector<8xf32> to vector<8x1xf32>
    %c0_22 = arith.constant 0 : index
    %c0_23 = arith.constant 0 : index
    %59 = vector.load %arg3[%c0_22, %c0_23] : memref<8x63xf32, #tpu.memory_space<vmem>>, vector<8x63xf32>
    %c0_24 = arith.constant 0 : index
    %c0_25 = arith.constant 0 : index
    %60 = vector.load %arg4[%c0_24, %c0_25] : memref<8x10xf32, #tpu.memory_space<vmem>>, vector<8x10xf32>
    %61 = arith.mulf %59, %59 : vector<8x63xf32>
    %cst_26 = arith.constant dense<0.000000e+00> : vector<8xf32>
    %62 = vector.multi_reduction <add>, %61, %cst_26 [1] : vector<8x63xf32> to vector<8xf32>
    %63 = vector.shape_cast %62 : vector<8xf32> to vector<8x1xf32>
    %64 = arith.mulf %60, %60 : vector<8x10xf32>
    %cst_27 = arith.constant dense<0.000000e+00> : vector<8xf32>
    %65 = vector.multi_reduction <add>, %64, %cst_27 [1] : vector<8x10xf32> to vector<8xf32>
    %66 = vector.shape_cast %65 : vector<8xf32> to vector<8x1xf32>
    %c0_28 = arith.constant 0 : index
    %c0_29 = arith.constant 0 : index
    %c0_30 = arith.constant 0 : index
    %67 = vector.load %arg5[%c0_28, %c0_29, %c0_30] : memref<3x8x16xf32, #tpu.memory_space<vmem>>, vector<1x8x16xf32>
    %68 = vector.shape_cast %67 : vector<1x8x16xf32> to vector<8x16xf32>
    %c1_31 = arith.constant 1 : index
    %c0_32 = arith.constant 0 : index
    %c0_33 = arith.constant 0 : index
    %69 = vector.load %arg5[%c1_31, %c0_32, %c0_33] : memref<3x8x16xf32, #tpu.memory_space<vmem>>, vector<1x8x16xf32>
    %70 = vector.shape_cast %69 : vector<1x8x16xf32> to vector<8x16xf32>
    %c2_34 = arith.constant 2 : index
    %c0_35 = arith.constant 0 : index
    %c0_36 = arith.constant 0 : index
    %71 = vector.load %arg5[%c2_34, %c0_35, %c0_36] : memref<3x8x16xf32, #tpu.memory_space<vmem>>, vector<1x8x16xf32>
    %72 = vector.shape_cast %71 : vector<1x8x16xf32> to vector<8x16xf32>
    %73 = arith.mulf %5, %5 : vector<8x1xf32>
    %74 = arith.mulf %6, %6 : vector<8x1xf32>
    %75 = arith.addf %73, %74 : vector<8x1xf32>
    %76 = arith.mulf %7, %7 : vector<8x1xf32>
    %77 = arith.addf %75, %76 : vector<8x1xf32>
    %78 = math.rsqrt %77 : vector<8x1xf32>
    %79 = vector.broadcast %5 : vector<8x1xf32> to vector<8x16xf32>
    %80 = arith.mulf %68, %79 : vector<8x16xf32>
    %81 = vector.broadcast %6 : vector<8x1xf32> to vector<8x16xf32>
    %82 = arith.mulf %70, %81 : vector<8x16xf32>
    %83 = arith.addf %80, %82 : vector<8x16xf32>
    %84 = vector.broadcast %7 : vector<8x1xf32> to vector<8x16xf32>
    %85 = arith.mulf %72, %84 : vector<8x16xf32>
    %86 = arith.addf %83, %85 : vector<8x16xf32>
    %87 = vector.broadcast %8 : vector<8x1xf32> to vector<8x16xf32>
    %88 = arith.addf %86, %87 : vector<8x16xf32>
    %89 = vector.broadcast %78 : vector<8x1xf32> to vector<8x16xf32>
    %90 = arith.mulf %88, %89 : vector<8x16xf32>
    %cst_37 = arith.constant 5.000000e-03 : f32
    %91 = vector.broadcast %cst_37 : f32 to vector<8x16xf32>
    %92 = arith.subf %90, %91 : vector<8x16xf32>
    %cst_38 = arith.constant -1.000000e+00 : f32
    %cst_39 = arith.constant 0.000000e+00 : f32
    %93 = vector.broadcast %cst_38 : f32 to vector<8x16xf32>
    %94 = arith.maximumf %93, %92 : vector<8x16xf32>
    %95 = vector.broadcast %cst_39 : f32 to vector<8x16xf32>
    %96 = arith.minimumf %95, %94 : vector<8x16xf32>
    %97 = arith.mulf %92, %92 : vector<8x16xf32>
    %cst_40 = arith.constant 9.99999974E-5 : f32
    %98 = vector.broadcast %cst_40 : f32 to vector<8x16xf32>
    %99 = arith.mulf %98, %97 : vector<8x16xf32>
    %cst_41 = arith.constant 9.99999974E-5 : f32
    %100 = vector.broadcast %cst_41 : f32 to vector<8x16xf32>
    %101 = arith.addf %97, %100 : vector<8x16xf32>
    %102 = tpu.reciprocal %101 {approx = true} : vector<8x16xf32> -> vector<8x16xf32>
    %103 = arith.mulf %99, %102 : vector<8x16xf32>
    %104 = arith.mulf %96, %96 : vector<8x16xf32>
    %cst_42 = arith.constant dense<0.000000e+00> : vector<8xf32>
    %105 = vector.multi_reduction <add>, %104, %cst_42 [1] : vector<8x16xf32> to vector<8xf32>
    %106 = vector.shape_cast %105 : vector<8xf32> to vector<8x1xf32>
    %cst_43 = arith.constant dense<0.000000e+00> : vector<8xf32>
    %107 = vector.multi_reduction <add>, %103, %cst_43 [1] : vector<8x16xf32> to vector<8xf32>
    %108 = vector.shape_cast %107 : vector<8xf32> to vector<8x1xf32>
    %cst_44 = arith.constant 0.020833334 : f32
    %109 = vector.broadcast %cst_44 : f32 to vector<8x1xf32>
    %110 = arith.mulf %56, %109 : vector<8x1xf32>
    %cst_45 = arith.constant 1.180000e+02 : f32
    %111 = vector.broadcast %cst_45 : f32 to vector<8x1xf32>
    %112 = arith.mulf %111, %110 : vector<8x1xf32>
    %cst_46 = arith.constant 1.000000e+00 : f32
    %113 = vector.broadcast %cst_46 : f32 to vector<8x1xf32>
    %114 = arith.mulf %112, %113 : vector<8x1xf32>
    %cst_47 = arith.constant 0.000000e+00 : f32
    %115 = vector.broadcast %cst_47 : f32 to vector<8x1xf32>
    %116 = arith.cmpf ogt, %58, %115 : vector<8x1xf32>
    %cst_48 = arith.constant 0.000000e+00 : f32
    %117 = vector.broadcast %cst_48 : f32 to vector<8x1xf32>
    %118 = arith.select %116, %114, %117 : vector<8x1xi1>, vector<8x1xf32>
    %cst_49 = arith.constant 1.000000e+00 : f32
    %119 = vector.broadcast %cst_49 : f32 to vector<8x1xf32>
    %120 = arith.mulf %63, %119 : vector<8x1xf32>
    %cst_50 = arith.constant 1.000000e+00 : f32
    %121 = vector.broadcast %cst_50 : f32 to vector<8x1xf32>
    %122 = arith.mulf %66, %121 : vector<8x1xf32>
    %cst_51 = arith.constant 1.000000e+00 : f32
    %123 = vector.broadcast %cst_51 : f32 to vector<8x1xf32>
    %124 = arith.mulf %123, %106 : vector<8x1xf32>
    %cst_52 = arith.constant 6.250000e-02 : f32
    %125 = vector.broadcast %cst_52 : f32 to vector<8x1xf32>
    %126 = arith.mulf %124, %125 : vector<8x1xf32>
    %127 = arith.mulf %108, %108 : vector<8x1xf32>
    %cst_53 = arith.constant 1.000000e+00 : f32
    %128 = vector.broadcast %cst_53 : f32 to vector<8x1xf32>
    %129 = arith.mulf %128, %127 : vector<8x1xf32>
    %130 = arith.addf %120, %118 : vector<8x1xf32>
    %131 = arith.addf %130, %122 : vector<8x1xf32>
    %132 = arith.addf %131, %126 : vector<8x1xf32>
    %133 = arith.addf %132, %129 : vector<8x1xf32>
    %c0_54 = arith.constant 0 : index
    %c0_55 = arith.constant 0 : index
    %134 = vector.load %arg6[%c0_54, %c0_55] : memref<8x1xf32, #tpu.memory_space<vmem>>, vector<8x1xf32>
    tpu.vector_store %arg6[%c0_54, %c0_55], %133 {strides = array<i32>} : memref<8x1xf32, #tpu.memory_space<vmem>>, vector<8x1xf32>,
    return
  }
  func.func @transform_0(%arg0: i32) -> (i32, i32) {
    %c0_i32 = arith.constant 0 : i32
    %c0_i32_0 = arith.constant 0 : i32
    return %arg0, %c0_i32 : i32, i32
  }
  func.func @transform_1(%arg0: i32) -> (i32, i32, i32) {
    %c0_i32 = arith.constant 0 : i32
    %c0_i32_0 = arith.constant 0 : i32
    %c0_i32_1 = arith.constant 0 : i32
    return %c0_i32, %arg0, %c0_i32_0 : i32, i32, i32
  }
  func.func @transform_2(%arg0: i32) -> (i32, i32) {
    %c0_i32 = arith.constant 0 : i32
    %c0_i32_0 = arith.constant 0 : i32
    return %arg0, %c0_i32 : i32, i32
  }
  func.func @transform_3(%arg0: i32) -> (i32, i32) {
    %c0_i32 = arith.constant 0 : i32
    %c0_i32_0 = arith.constant 0 : i32
    return %arg0, %c0_i32 : i32, i32
  }
  func.func @transform_4(%arg0: i32) -> (i32, i32, i32) {
    %c0_i32 = arith.constant 0 : i32
    %c0_i32_0 = arith.constant 0 : i32
    %c0_i32_1 = arith.constant 0 : i32
    return %c0_i32, %arg0, %c0_i32_0 : i32, i32, i32
  }
  func.func @transform_5(%arg0: i32) -> (i32, i32) {
    %c0_i32 = arith.constant 0 : i32
    %c0_i32_0 = arith.constant 0 : i32
    return %arg0, %c0_i32 : i32, i32
  }
}

</mosaic_0001>

<bundles_post_ra>
// kernel: tpu_custom_call.1
= control target key start
LH: loop header
LB: loop body
LE: loop exit
PB: predicated region body
PF: predicated region fallthrough
CT: control target
= control target key end

     0   :  { %10 = vsyncpa [#allocation3], 0  ;;  %s460_s0 = inlined_call_operand.hbm [shape: f32[8,8], index: 0, kind: input, shape index: {}]   ;;  %s461_s1 = inlined_call_operand.hbm [shape: f32[7,8,24], index: 1, kind: input, shape index: {}]   ;;  %s462_s2 = inlined_call_operand.hbm [shape: f32[8,63], index: 2, kind: input, shape index: {}]   ;;  %s463_s3 = inlined_call_operand.vmem [shape: f32[8,10], index: 3, kind: input, shape index: {}]   ;;  %s464_s4 = inlined_call_operand.hbm [shape: f32[3,8,16], index: 4, kind: input, shape index: {}]   ;;  %s465_s5 = inlined_call_operand.vmem [shape: f32[8,1], index: 5, kind: output, shape index: {}]  }
   0x1   :  { %11 = vsyncpa [#allocation5], 0 }
   0x2   :  { %12 = vsyncpa [#allocation8], 0  ;;  %s354_s18 = smov [#allocation4]   ;;  %s260_s22 = scalar_lea.hbm %s461_s1, 896 }
   0x3   :  { %s28_s19 = sshll.u32 %s354_s18, 4  ;;  %p261_p0 = scmp.ne.s32.totalorder %s461_s1, %s260_s22  ;;  %s29_s19 = int_to_ptr.vmem [resolvable:$true] %s28_s19 }
   0x4   :  { %p264_p1 = scmp.lt.u32.totalorder %s260_s22, %s461_s1 }
   0x6   :  { %p266_p2 = pnand %p264_p1, %p261_p0 }
   0x8   :  { %269 = shalt.err (!%p266_p2)
}
   0x9   :  { %s270_s27 = scalar_lea.vmem %s29_s19, 896  ;;  %p275_p4 = scmp.lt.s32.totalorder %s29_s19, %s29_s19 }
   0xa   :  { %p271_p3 = scmp.ne.s32.totalorder %s29_s19, %s270_s27  ;;  %p276_p5 = scmp.lt.s32.totalorder %s270_s27, %s270_s27 }
   0xc   :  { %p277_p6 = por %p276_p5, %p275_p4 }
   0xe   :  { %p278_p7 = pnand %p277_p6, %p271_p3 }
  0x10   :  { %281 = shalt.err (!%p278_p7)
}
  0x11   :  { %s355_s28 = smov 128   ;;  %s356_s29 = smov 8  }
  0x12   :  { %34 = dma.hbm_to_vmem [thread:$0]  %s461_s1, 896, %s29_s19, [#allocation5], %s355_s28, %s355_s28, %s356_s29  }
  0x13   :  { %s357_s7 = smov [#allocation2]   ;;  %s358_s9 = smov [#allocation6]  }
  0x14   :  { %s19_s8 = sshll.u32 %s357_s7, 4  ;;  %s41_s10 = sshll.u32 %s358_s9, 4  ;;  %s20_s8 = int_to_ptr.vmem [resolvable:$true] %s19_s8  ;;  %s42_s10 = int_to_ptr.vmem [resolvable:$true] %s41_s10 }
  0x15   :  { %s282_s13 = scalar_lea.hbm %s460_s0, 128 }
  0x16   :  { %p283_p8 = scmp.ne.s32.totalorder %s460_s0, %s282_s13  ;;  %p286_p9 = scmp.lt.u32.totalorder %s282_s13, %s460_s0 }
  0x18   :  { %p288_p10 = pnand %p286_p9, %p283_p8 }
  0x1a   :  { %291 = shalt.err (!%p288_p10)
}
  0x1b   :  { %s292_s1 = scalar_lea.vmem %s20_s8, 128  ;;  %p297_p12 = scmp.lt.s32.totalorder %s20_s8, %s20_s8 }
  0x1c   :  { %p293_p11 = scmp.ne.s32.totalorder %s20_s8, %s292_s1  ;;  %p298_p13 = scmp.lt.s32.totalorder %s292_s1, %s292_s1 }
  0x1e   :  { %p299_p0 = por %p298_p13, %p297_p12 }
  0x20   :  { %p300_p1 = pnand %p299_p0, %p293_p11 }
  0x22   :  { %303 = shalt.err (!%p300_p1)
}
  0x23   :  { %22 = dma.hbm_to_vmem [thread:$0]  %s460_s0, 128, %s20_s8, [#allocation3]  }
  0x24   :  { %s304_s22 = scalar_lea.hbm %s462_s2, 128 }
  0x25   :  { %p305_p2 = scmp.ne.s32.totalorder %s462_s2, %s304_s22  ;;  %p308_p3 = scmp.lt.u32.totalorder %s304_s22, %s462_s2 }
  0x27   :  { %p310_p4 = pnand %p308_p3, %p305_p2 }
  0x29   :  { %313 = shalt.err (!%p310_p4)
}
  0x2a   :  { %s314_s27 = scalar_lea.vmem %s42_s10, 128  ;;  %p319_p6 = scmp.lt.s32.totalorder %s42_s10, %s42_s10 }
  0x2b   :  { %p315_p5 = scmp.ne.s32.totalorder %s42_s10, %s314_s27  ;;  %p320_p7 = scmp.lt.s32.totalorder %s314_s27, %s314_s27 }
  0x2d   :  { %p321_p8 = por %p320_p7, %p319_p6 }
  0x2f   :  { %p322_p9 = pnand %p321_p8, %p315_p5 }
  0x31   :  { %325 = shalt.err (!%p322_p9)
}
  0x32   :  { %44 = dma.hbm_to_vmem [thread:$0]  %s462_s2, 128, %s42_s10, [#allocation5]  }
  0x33   :  { %s359_s6 = smov [#allocation7]   ;;  %s326_s11 = scalar_lea.hbm %s464_s4, 384 }
  0x34   :  { %s52_s7 = sshll.u32 %s359_s6, 4  ;;  %p327_p10 = scmp.ne.s32.totalorder %s464_s4, %s326_s11  ;;  %s53_s7 = int_to_ptr.vmem [resolvable:$true] %s52_s7 }
  0x35   :  { %p330_p11 = scmp.lt.u32.totalorder %s326_s11, %s464_s4 }
  0x37   :  { %p332_p12 = pnand %p330_p11, %p327_p10 }
  0x39   :  { %335 = shalt.err (!%p332_p12)
}
  0x3a   :  { %s336_s16 = scalar_lea.vmem %s53_s7, 384  ;;  %p341_p0 = scmp.lt.s32.totalorder %s53_s7, %s53_s7 }
  0x3b   :  { %p337_p13 = scmp.ne.s32.totalorder %s53_s7, %s336_s16  ;;  %p342_p1 = scmp.lt.s32.totalorder %s336_s16, %s336_s16 }
  0x3d   :  { %p343_p2 = por %p342_p1, %p341_p0 }
  0x3f   :  { %p344_p3 = pnand %p343_p2, %p337_p13 }
  0x41   :  { %347 = shalt.err (!%p344_p3)
}
  0x42   :  { %58 = dma.hbm_to_vmem [thread:$0]  %s464_s4, 384, %s53_s7, [#allocation8], %s355_s28, %s355_s28, %s356_s29  }
  0x43   :  { %348 = dma.done.wait [#allocation3], 128  }
  0x44   :  { %349 = vsyncadd [#allocation3], 4294967168 }
  0x45   :  { %350 = dma.done.wait [#allocation5], 1024  }
  0x46   :  { %351 = vsyncadd [#allocation5], 4294966272 }
  0x47   :  { %352 = dma.done.wait [#allocation8], 384  }
  0x48   :  { %353 = vsyncadd [#allocation8], 4294966912  ;;  %v360_v0 = vmov 0   ;;  %v361_v1 = vmov 2   ;;  %v71_v2 = vld [vmem:[#allocation2] sm:$0xff]  ;;  %s362_s17 = smov 127  }
  0x49   :  { %241 = vset.pattern.permute.xlu1 %v360_v0  ;;  %243 = vset.pattern.permute.xlu0 %v361_v1  ;;  %v150_v3 = vmul.f32 %v71_v2, %v71_v2  ;;  %v363_v4 = vmov 1   ;;  %s364_s1 = smov 126   ;;  %v365_v5 = vmov 3   ;;  %v366_v6 = vmov 4   ;;  %v76_v11 = vld [vmem:[#allocation4 + $0x10] sm:$0xff]  ;;  %v72_v15 = vld [vmem:[#allocation4] sm:$0xff] }
  0x4a   :  { %89 = vperm.xlu1 %241, %v71_v2   ;;  %v367_v7 = vmov 5   ;;  %v368_v8 = vmov 6   ;;  %v369_v9 = vmov 7   ;;  %250 = vrcp.f32 %v76_v11  ;;  %v74_v18 = vld [vmem:[#allocation4 + $0x8] sm:$0xff]  ;;  %v80_v25 = vld [vmem:[#allocation4 + $0x20] sm:$0xff]  ;;  %v78_v27 = vld [vmem:[#allocation4 + $0x18] sm:$0xff] }
  0x4b   :  { %152 = vrot.lane.b32.xlu0 %v150_v3, %s362_s17  ;;  %v82_v37 = vld [vmem:[#allocation4 + $0x28] sm:$0xff]  ;;  %v84_v38 = vld [vmem:[#allocation4 + $0x30] sm:$0xff]  ;;  %v133_v47 = vld [vmem:[#allocation6] sm:$0xff]  ;;  %vm126_vm0 = vcmask 195584   ;;  %vm136_vm1 = vcmask 515072   ;;  %vm141_vm2 = vcmask 80896  }
  0x4c   :  { %v123_v41 = vmul.f32 %v84_v38, %v82_v37  ;;  %v134_v48 = vld [vmem:[%s463_s3] sm:$0xff]  ;;  %v135_v52 = vmul.f32 %v133_v47, %v133_v47  ;;  %v145_v58 = vld [vmem:[#allocation7] sm:$0xff]  ;;  %v147_v59 = vld [vmem:[#allocation7 + $0x8] sm:$0xff]  ;;  %vm198_vm3 = vcmask 130048   ;;  %vm215_vm5 = vcmask 7168  }
  0x4d   :  { %v140_v53 = vmul.f32 %v134_v48, %v134_v48  ;;  %v149_v63 = vld [vmem:[#allocation7 + $0x10] sm:$0xff] }
  0x4e   :  { %242 = vset.pattern.permute.xlu1 %v363_v4  ;;  %v124_v46 = vmul.f32 %v123_v41, %v123_v41  ;;  %v130_v51 = vsel %vm126_vm0, %v123_v41, 0.0  ;;  %v137_v55 = vsel %vm136_vm1, %v135_v52, 0.0 }
  0x4f   :  { %100 = vperm.xlu1 %242, %v71_v2   ;;  %156 = vrot.lane.b32.xlu0 %v150_v3, %s364_s1  ;;  %v142_v56 = vsel %vm141_vm2, %v140_v53, 0.0 }
  0x53   :  { %244 = vset.pattern.permute.xlu1 %v365_v5  ;;  %95 = vperm.xlu0 %243, %v71_v2  }
  0x54   :  { %106 = vperm.xlu1 %244, %v71_v2   ;;  %v251_v19 = vpop.eup %250 }
  0x57   :  { %246 = vset.pattern.permute.xlu0 %v367_v7 }
  0x58   :  { %245 = vset.pattern.permute.xlu1 %v366_v6  ;;  %167 = vperm.xlu0 %246, %v71_v2  }
  0x59   :  { %162 = vperm.xlu1 %245, %v71_v2  }
  0x5c   :  { %249 = vset.pattern.permute.xlu0 %v366_v6 }
  0x5d   :  { %247 = vset.pattern.permute.xlu1 %v368_v8 }
  0x5e   :  { %173 = vperm.xlu1 %247, %v71_v2  }
  0x62   :  { %248 = vset.pattern.permute.xlu1 %v369_v9 }
  0x63   :  { %179 = vperm.xlu1 %248, %v71_v2  }
  0xbd   :  { %v153_v10 = vpop.permute.xlu0 %152 }
  0xbe   :  { %v155_v12 = vadd.f32 %v153_v10, %v150_v3 }
  0xc1   :  { %v157_v13 = vpop.permute.xlu0 %156 }
  0xc2   :  { %v159_v14 = vadd.f32 %v157_v13, %v155_v12 }
  0xc4   :  { %252 = vrsqrt.f32 %v159_v14 }
  0xc9   :  { %v90_v16 = vpop.permute.xlu1 %89 }
  0xca   :  { %v92_v17 = vmul.f32 %v90_v16, %v72_v15 }
  0xcc   :  { %v93_v23 = vmul.f32 %v251_v19, %v92_v17 }
  0xce   :  { %v101_v20 = vpop.permute.xlu1 %100  ;;  %v253_v21 = vpop.eup %252 }
  0xcf   :  { %v103_v22 = vmul.f32 %v101_v20, %v74_v18  ;;  %185 = vperm.xlu0 %249, %v253_v21  }
  0xd1   :  { %v104_v24 = vmul.f32 %v251_v19, %v103_v22 }
  0xd2   :  { %v96_v28 = vpop.permute.xlu0 %95 }
  0xd3   :  { %v107_v26 = vpop.permute.xlu1 %106  ;;  %v98_v30 = vadd.f32 %v96_v28, %v93_v23 }
  0xd4   :  { %v109_v29 = vadd.f32 %v107_v26, %v104_v24 }
  0xd5   :  { %v110_v32 = vsub.f32 %v78_v27, %v98_v30 }
  0xd6   :  { %v111_v31 = vsub.f32 %v80_v25, %v109_v29 }
  0xd7   :  { %v112_v34 = vmul.f32 %v110_v32, %v110_v32  ;;  %v168_v60 = vpop.permute.xlu0 %167 }
  0xd8   :  { %v117_v33 = vmul.f32 %v111_v31, %v111_v31  ;;  %v163_v57 = vpop.permute.xlu1 %162  ;;  %v170_v62 = vmul.f32 %v168_v60, %v147_v59 }
  0xd9   :  { %v114_v36 = vadd.f32 10000.0, %v112_v34  ;;  %v113_v40 = vmul.f32 10000.0, %v112_v34  ;;  %v165_v61 = vmul.f32 %v163_v57, %v145_v58 }
  0xda   :  { %v119_v35 = vadd.f32 10000.0, %v117_v33  ;;  %v118_v39 = vmul.f32 10000.0, %v117_v33 }
  0xdb   :  { %v171_v1 = vadd.f32 %v170_v62, %v165_v61 }
  0xdc   :  { %254 = vrcp.f32 %v119_v35 }
  0xdd   :  { %256 = vrcp.f32 %v114_v36  ;;  %v174_v0 = vpop.permute.xlu1 %173 }
  0xde   :  { %v176_v2 = vmul.f32 %v174_v0, %v149_v63 }
  0xe0   :  { %v177_v3 = vadd.f32 %v176_v2, %v171_v1 }
  0xe2   :  { %v180_v4 = vpop.permute.xlu1 %179 }
  0xe3   :  { %v182_v5 = vadd.f32 %v180_v4, %v177_v3 }
  0xe6   :  { %v255_v42 = vpop.eup %254 }
  0xe7   :  { %v257_v43 = vpop.eup %256  ;;  %v121_v44 = vmul.f32 %v255_v42, %v118_v39 }
  0xe8   :  { %v116_v45 = vmul.f32 %v257_v43, %v113_v40 }
  0xea   :  { %v122_v49 = vadd.f32 %v121_v44, %v116_v45 }
  0xec   :  { %v125_v50 = vmul.f32 %v124_v46, %v122_v49 }
  0xee   :  { %v127_v54 = vsel %vm126_vm0, %v125_v50, 0.0  ;;  %131 = vadd.xlane.f32.xlu0 %v130_v51 }
  0xef   :  { %128 = vadd.xlane.f32.xlu1 %v127_v54 }
  0xf2   :  { %143 = vadd.xlane.f32.xlu0 %v142_v56 }
  0xf3   :  { %138 = vadd.xlane.f32.xlu1 %v137_v55 }
 0x14e   :  { %v186_v6 = vpop.permute.xlu0 %185 }
 0x14f   :  { %v188_v7 = vmul.f32 %v186_v6, %v182_v5 }
 0x151   :  { %v224_v8 = vadd.f32 -0.005, %v188_v7 }
 0x153   :  { %v190_v9 = vmax.f32 %v224_v8, -1.0  ;;  %v192_v10 = vmul.f32 %v224_v8, %v224_v8 }
 0x155   :  { %v194_v11 = vadd.f32 0.0001, %v192_v10  ;;  %v191_v12 = vmin.f32 %v190_v9, 0.0  ;;  %v193_v15 = vmul.f32 0.0001, %v192_v10 }
 0x157   :  { %258 = vrcp.f32 %v194_v11  ;;  %v197_v13 = vmul.f32 %v191_v12, %v191_v12 }
 0x159   :  { %v199_v14 = vsel %vm198_vm3, %v197_v13, 0.0 }
 0x15a   :  { %200 = vadd.xlane.f32.xlu1 %v199_v14 }
 0x161   :  { %v259_v16 = vpop.eup %258 }
 0x162   :  { %v196_v17 = vmul.f32 %v259_v16, %v193_v15 }
 0x164   :  { %v202_v18 = vsel %vm198_vm3, %v196_v17, 0.0 }
 0x165   :  { %203 = vadd.xlane.f32.xlu0 %v202_v18 }
 0x17b   :  { %v132_v21 = vpop.xlane.xlu0 %131 }
 0x17c   :  { %v129_v19 = vpop.xlane.xlu1 %128  ;;  %vm207_vm4 = vcmp.gt.f32.partialorder %v132_v21, 0.0 }
 0x17d   :  { %v205_v20 = vmul.f32 0.020833334, %v129_v19 }
 0x17f   :  { %v206_v22 = vmul.f32 118.0, %v205_v20  ;;  %v144_v27 = vpop.xlane.xlu0 %143 }
 0x180   :  { %v139_v23 = vpop.xlane.xlu1 %138 }
 0x181   :  { %v208_v24 = vsel %vm207_vm4, %v206_v22, 0.0 }
 0x182   :  { %v211_v26 = vadd.f32 %v208_v24, %v139_v23 }
 0x184   :  { %v212_v29 = vadd.f32 %v211_v26, %v144_v27 }
 0x1e7   :  { %v201_v25 = vpop.xlane.xlu1 %200 }
 0x1e8   :  { %v209_v28 = vmul.f32 0.0625, %v201_v25 }
 0x1ea   :  { %v213_v31 = vadd.f32 %v212_v29, %v209_v28 }
 0x1f2   :  { %v204_v30 = vpop.xlane.xlu0 %203 }
 0x1f3   :  { %v210_v32 = vmul.f32 %v204_v30, %v204_v30 }
 0x1f5   :  { %v214_v33 = vadd.f32 %v213_v31, %v210_v32 }
 0x1f7   :  { %216 = vst.msk [vmem:[%s465_s5] sm:$0xff] %vm215_vm5, %v214_v33 }
 0x1f8   :  { %221 = vsyncpa [#allocation3], 1 }
 0x1f9   :  { %222 = vsyncpa [#allocation5], 1 }
 0x1fa   :  { %223 = vsyncpa [#allocation8], 1 }

</bundles_post_ra>
